<compile_context>
chip_gen: v7x
topology: tpu7x:2x2x1
jax: 0.10.0
libtpu: 0.0.40
codegen_flags: <defaults>
</compile_context>

<pallas_src>
import functools

import jax
import jax.numpy as jnp
from jax import lax
from jax.experimental import pallas as pl
from jax.experimental.pallas import tpu as pltpu


# ---------------------------------------------------------------------------
# Kernels
# ---------------------------------------------------------------------------

def _mgrn_kernel(gamma_ref, beta_ref, x_ref, o_ref, *, mul_in_f32):
    """Single-pass MGRN. x block: (TN, C, HW); gamma/beta block: (1, C, 1)."""
    x = x_ref[...]                                            # native dtype
    # Fused square + reduce over the lane (HW) axis, accumulated in f32.
    sumsq = jnp.sum(jnp.square(x.astype(jnp.float32)), axis=2, keepdims=True)
    g = jnp.sqrt(sumsq)                                       # (TN, C, 1) f32
    g_mean = jnp.mean(g, axis=1, keepdims=True)               # (TN, 1, 1)
    inv = pl.reciprocal(g_mean + 1e-6, approx=False)          # EUP, exact
    scale = gamma_ref[...] * (g * inv) + beta_ref[...]        # (TN, C, 1) f32
    if mul_in_f32:
        # f32 multiply + single downcast (f32 inputs / parts without bf16 VALU).
        o_ref[...] = (scale * x.astype(jnp.float32)).astype(o_ref.dtype)
    else:
        # Keep the dominant elementwise pass in the native (sub-f32) dtype.
        o_ref[...] = (scale.astype(x.dtype) * x).astype(o_ref.dtype)


def _sumsq_kernel(x_ref, ss_ref, *, hw, hw_chunk):
    """Two-pass fallback, pass 1: accumulate sum(x^2) over HW chunks."""
    h = pl.program_id(1)

    @pl.when(h == 0)
    def _():
        ss_ref[...] = jnp.zeros_like(ss_ref)

    x = x_ref[...].astype(jnp.float32)                        # (1, C, hw_chunk)
    if hw % hw_chunk != 0:
        # Mask out-of-bounds lanes of the partial last chunk.
        pos = h * hw_chunk + lax.broadcasted_iota(jnp.int32, x.shape, 2)
        x = jnp.where(pos < hw, x, 0.0)
    ss_ref[...] += jnp.sum(x * x, axis=2, keepdims=True)


def _scale_kernel(scale_ref, x_ref, o_ref, *, mul_in_f32):
    """Two-pass fallback, pass 2: out = scale * x (pure elementwise)."""
    x = x_ref[...]
    if mul_in_f32:
        o_ref[...] = (scale_ref[...] * x.astype(jnp.float32)).astype(o_ref.dtype)
    else:
        o_ref[...] = (scale_ref[...].astype(x.dtype) * x).astype(o_ref.dtype)


# ---------------------------------------------------------------------------
# Generation-aware parameters & tiling heuristics
# ---------------------------------------------------------------------------

def _hw_params():
    """Best-effort TPU generation query: (target_tile_bytes, vmem_cap, num_tc,
    has_bf16_valu). Falls back to conservative defaults off-TPU."""
    vmem_bytes = 128 << 20
    try:
        info = pltpu.get_tpu_info()
        vmem_bytes = int(getattr(info, "vmem_capacity_bytes", vmem_bytes))
    except Exception:
        pass
    kind = ""
    try:
        kind = jax.devices()[0].device_kind.lower()
    except Exception:
        pass
    num_tc = 2 if ("v7" in kind or "v5p" in kind or "v4" in kind) else 1
    has_bf16_valu = ("v6" in kind) or ("v7" in kind)
    # Leave Mosaic scratch headroom; never request the whole physical VMEM.
    vmem_cap = int(min(max(vmem_bytes - (12 << 20), 16 << 20), 100 << 20))
    # 3-4 MiB slabs keep the ~0.35us/step overhead below ~10% of DMA time.
    target_bytes = (3 << 20) if num_tc > 1 else (4 << 20)
    target_bytes = int(min(target_bytes, max(512 << 10, vmem_cap // 8)))
    return target_bytes, vmem_cap, num_tc, has_bf16_valu


def _choose_batch_block(n, per_batch_bytes, target_bytes, num_tc):
    """Pick TN (batch rows per grid step) with a DMA + per-step-overhead cost
    model. ceil(steps / num_tc) models megacore sharding of the parallel batch
    axis, so even grids on 2-TC parts win automatically; exact divisors of N
    are preferred so no partial blocks are emitted."""
    max_tn = int(max(1, min(n, target_bytes // max(per_batch_bytes, 1))))
    overhead_bytes = 600 << 10            # ~0.35 us of HBM time per grid step
    best_tn, best_cost = 1, None
    for tn in range(1, max_tn + 1):
        steps = -(-n // tn)
        per_core = -(-steps // num_tc)
        cost = float(per_core * (overhead_bytes + 2 * tn * per_batch_bytes))
        if per_core < 2:
            cost *= 1.5                   # no DMA/compute overlap on that core
        if n % tn != 0:
            cost *= 1.03                  # prefer exact divisors (no padding)
        if best_cost is None or cost < best_cost:
            best_tn, best_cost = tn, cost
    return best_tn


# ---------------------------------------------------------------------------
# Wrappers
# ---------------------------------------------------------------------------

def _mgrn_two_pass(x, gamma3, beta3, target_bytes, vmem_cap, mul_in_f32):
    """Fallback for feature maps too large to keep one batch row in VMEM."""
    N, C, HW = x.shape
    itemsize = jnp.dtype(x.dtype).itemsize
    sub_pack = max(8, 32 // itemsize)
    c_pad = -(-C // sub_pack) * sub_pack

    hw_chunk = max(128, (int(target_bytes // (c_pad * itemsize)) // 128) * 128)
    hw_pad = -(-HW // 128) * 128
    hw_chunk = min(hw_chunk, hw_pad)
    grid_h = -(-HW // hw_chunk)
    chunk_bytes = c_pad * hw_chunk * itemsize

    # Pass 1: per-(n, c) sum of squares, accumulated over HW chunks.
    vmem1 = int(min(max(3 * chunk_bytes + chunk_bytes * (4 // itemsize)
                        + (2 << 20), 16 << 20), vmem_cap))
    sumsq = pl.pallas_call(
        functools.partial(_sumsq_kernel, hw=HW, hw_chunk=hw_chunk),
        out_shape=jax.ShapeDtypeStruct((N, C, 1), jnp.float32),
        grid_spec=pltpu.PrefetchScalarGridSpec(
            num_scalar_prefetch=0,
            grid=(N, grid_h),
            in_specs=[pl.BlockSpec((1, C, hw_chunk), lambda n, h: (n, 0, h))],
            out_specs=pl.BlockSpec((1, C, 1), lambda n, h: (n, 0, 0)),
        ),
        compiler_params=pltpu.CompilerParams(
            dimension_semantics=("parallel", "arbitrary"),
            vmem_limit_bytes=vmem1,
        ),
    )(x)

    # Finalize the tiny (N, C, 1) scale in plain XLA.
    g = jnp.sqrt(sumsq)
    scale = gamma3 * (g / (jnp.mean(g, axis=1, keepdims=True) + 1e-6)) + beta3

    # Pass 2: rescan x and apply the scale.
    vmem2 = int(min(max(5 * chunk_bytes + (2 << 20), 16 << 20), vmem_cap))
    return pl.pallas_call(
        functools.partial(_scale_kernel, mul_in_f32=mul_in_f32),
        out_shape=jax.ShapeDtypeStruct((N, C, HW), x.dtype),
        grid_spec=pltpu.PrefetchScalarGridSpec(
            num_scalar_prefetch=0,
            grid=(N, grid_h),
            in_specs=[
                pl.BlockSpec((1, C, 1), lambda n, h: (n, 0, 0)),
                pl.BlockSpec((1, C, hw_chunk), lambda n, h: (n, 0, h)),
            ],
            out_specs=pl.BlockSpec((1, C, hw_chunk), lambda n, h: (n, 0, h)),
        ),
        compiler_params=pltpu.CompilerParams(
            dimension_semantics=("parallel", "parallel"),
            vmem_limit_bytes=vmem2,
        ),
    )(scale, x)


def mgrn(x_nchw, gamma, beta):
    """MGRN forward. x_nchw: (N, C, H, W); gamma, beta: (1, C, 1, 1)."""
    N, C, H, W = x_nchw.shape
    HW = H * W
    x = x_nchw.reshape(N, C, HW)
    gamma3 = gamma.reshape(1, C, 1).astype(jnp.float32)
    beta3 = beta.reshape(1, C, 1).astype(jnp.float32)

    target_bytes, vmem_cap, num_tc, has_bf16_valu = _hw_params()
    itemsize = jnp.dtype(x.dtype).itemsize
    mul_in_f32 = (itemsize == 4) or (not has_bf16_valu)

    # Dtype-aware VMEM tile accounting: sublanes pack 32 bytes, lanes pad to 128.
    sub_pack = max(8, 32 // itemsize)
    c_pad = -(-C // sub_pack) * sub_pack
    hw_pad = -(-HW // 128) * 128
    per_batch_bytes = c_pad * hw_pad * itemsize

    # If one batch slab (double-buffered in + out, plus temporaries) does not
    # fit the per-core VMEM budget, use the HW-chunked two-pass fallback.
    single_pass_max = max(1 << 20, (vmem_cap - (2 << 20)) // 6)
    if per_batch_bytes > single_pass_max:
        out = _mgrn_two_pass(x, gamma3, beta3, target_bytes, vmem_cap, mul_in_f32)
        return out.reshape(N, C, H, W)

    tn = _choose_batch_block(N, per_batch_bytes,
                             min(target_bytes, single_pass_max), num_tc)
    steps = -(-N // tn)
    tile_bytes = tn * per_batch_bytes

    # Triple-buffer the input when there are enough steps to benefit (the
    # pipeline is DMA-limited; a 3rd buffer smooths in/out DMA contention).
    n_in_buf = 2
    x_spec = None
    if steps >= 3 and hasattr(pl, "Buffered"):
        try:
            x_spec = pl.BlockSpec((tn, C, HW), lambda n: (n, 0, 0),
                                  pipeline_mode=pl.Buffered(3))
            n_in_buf = 3
        except TypeError:
            x_spec = None
    if x_spec is None:
        x_spec = pl.BlockSpec((tn, C, HW), lambda n: (n, 0, 0))

    # VMEM request: input buffers + double-buffered output + small f32 scale/g
    # temporaries (+ one f32 working tile for sub-f32 inputs) + slack.
    vmem_needed = (n_in_buf + 2) * tile_bytes + 4 * tn * c_pad * 128 * 4 + (2 << 20)
    if itemsize < 4:
        vmem_needed += tn * c_pad * hw_pad * 4
    vmem_limit = int(min(max(vmem_needed, 16 << 20), vmem_cap))

    cost = pl.CostEstimate(
        flops=3 * N * C * HW,                 # x*x, reduce-add, scale*x
        transcendentals=N * C + N,            # sqrt per (n, c) + recip per n
        bytes_accessed=2 * N * C * HW * itemsize + 2 * C * 4,
    )

    out = pl.pallas_call(
        functools.partial(_mgrn_kernel, mul_in_f32=mul_in_f32),
        out_shape=jax.ShapeDtypeStruct((N, C, HW), x.dtype),
        grid_spec=pltpu.PrefetchScalarGridSpec(
            num_scalar_prefetch=0,
            grid=(steps,),
            in_specs=[
                pl.BlockSpec((1, C, 1), lambda n: (0, 0, 0)),   # gamma (resident)
                pl.BlockSpec((1, C, 1), lambda n: (0, 0, 0)),   # beta  (resident)
                x_spec,                                          # x
            ],
            out_specs=pl.BlockSpec((tn, C, HW), lambda n: (n, 0, 0)),
        ),
        compiler_params=pltpu.CompilerParams(
            dimension_semantics=("parallel",),
            vmem_limit_bytes=vmem_limit,
        ),
        cost_estimate=cost,
    )(gamma3, beta3, x)

    return out.reshape(N, C, H, W)


def mgrn_reference(x, gamma, beta):
    """Pure-JAX reference mirroring the PyTorch module."""
    g = jnp.sqrt(jnp.sum(x * x, axis=(2, 3), keepdims=True))
    g = g / (jnp.mean(g, axis=1, keepdims=True) + 1e-6)
    return (gamma * g + beta) * x


if __name__ == "__main__":
    key = jax.random.PRNGKey(0)
    k_x, k_g, k_b = jax.random.split(key, 3)

    # Primary test: small f32 case matching the module's expected layout.
    N, C, H, W = 2, 4, 16, 16
    x = jax.random.normal(k_x, (N, C, H, W), dtype=jnp.float32)
    # Module __init__ uses zeros/ones; random values exercise the full affine.
    gamma = jax.random.normal(k_g, (1, C, 1, 1), dtype=jnp.float32)
    beta = jax.random.normal(k_b, (1, C, 1, 1), dtype=jnp.float32)

    out = jax.block_until_ready(mgrn(x, gamma, beta))
    ref = mgrn_reference(x, gamma, beta)
    assert out.shape == (N, C, H, W)
    assert jnp.allclose(out, ref, atol=1e-5, rtol=1e-5), "f32 mismatch vs reference"

    # bf16 input path (native-dtype final multiply on bf16-capable VALUs).
    x_bf = x.astype(jnp.bfloat16)
    out_bf = jax.block_until_ready(mgrn(x_bf, gamma, beta))
    ref_bf = mgrn_reference(x_bf.astype(jnp.float32), gamma, beta)
    assert jnp.allclose(out_bf.astype(jnp.float32), ref_bf,
                        atol=2e-2, rtol=5e-2), "bf16 mismatch vs reference"

    # Awkward shape: odd spatial size (lane-sparse HW), N not a power of two.
    N2, C2, H2, W2 = 3, 8, 7, 9
    x2 = jax.random.normal(k_x, (N2, C2, H2, W2), dtype=jnp.float32)
    g2 = jax.random.normal(k_g, (1, C2, 1, 1), dtype=jnp.float32)
    b2 = jax.random.normal(k_b, (1, C2, 1, 1), dtype=jnp.float32)
    out2 = jax.block_until_ready(mgrn(x2, g2, b2))
    ref2 = mgrn_reference(x2, g2, b2)
    assert jnp.allclose(out2, ref2, atol=1e-5, rtol=1e-5), "awkward-shape mismatch"

    print("KERNEL_OK")
</pallas_src>

<mosaic_0001>
module attributes {stable_mosaic.version = 11 : i64} {
  func.func @_mgrn_kernel(%arg0: i32, %arg1: memref<1x4x1xf32, #tpu.memory_space<vmem>>, %arg2: memref<1x4x1xf32, #tpu.memory_space<vmem>>, %arg3: memref<2x4x256xf32, #tpu.memory_space<vmem>>, %arg4: memref<2x4x256xf32, #tpu.memory_space<vmem>>) attributes {dimension_semantics = [#tpu.dimension_semantics<parallel>], iteration_bounds = array<i64: 1>, scalar_prefetch = 0 : i64, scratch_operands = 0 : i64, tpu.core_type = #tpu.core_type<tc>, window_params = [{pipeline_mode = #tpu.pipeline_mode<synchronous>, transform_indices = @transform_0, window_bounds = array<i64: 1, 4, 1>}, {pipeline_mode = #tpu.pipeline_mode<synchronous>, transform_indices = @transform_1, window_bounds = array<i64: 1, 4, 1>}, {transform_indices = @transform_2, window_bounds = array<i64: 2, 4, 256>}, {transform_indices = @transform_3, window_bounds = array<i64: 2, 4, 256>}]} {
    %c0 = arith.constant 0 : index
    %c0_0 = arith.constant 0 : index
    %c0_1 = arith.constant 0 : index
    %0 = vector.load %arg3[%c0, %c0_0, %c0_1] : memref<2x4x256xf32, #tpu.memory_space<vmem>>, vector<2x4x256xf32>
    %1 = arith.mulf %0, %0 : vector<2x4x256xf32>
    %cst = arith.constant dense<0.000000e+00> : vector<2x4xf32>
    %2 = vector.multi_reduction <add>, %1, %cst [2] : vector<2x4x256xf32> to vector<2x4xf32>
    %3 = vector.shape_cast %2 : vector<2x4xf32> to vector<2x4x1xf32>
    %4 = math.sqrt %3 : vector<2x4x1xf32>
    %cst_2 = arith.constant dense<0.000000e+00> : vector<2x1xf32>
    %5 = vector.multi_reduction <add>, %4, %cst_2 [1] : vector<2x4x1xf32> to vector<2x1xf32>
    %6 = vector.shape_cast %5 : vector<2x1xf32> to vector<2x1x1xf32>
    %cst_3 = arith.constant 4.000000e+00 : f32
    %7 = vector.broadcast %cst_3 : f32 to vector<2x1x1xf32>
    %8 = arith.divf %6, %7 : vector<2x1x1xf32>
    %cst_4 = arith.constant 9.99999997E-7 : f32
    %9 = vector.broadcast %cst_4 : f32 to vector<2x1x1xf32>
    %10 = arith.addf %8, %9 : vector<2x1x1xf32>
    %11 = tpu.reciprocal %10 : vector<2x1x1xf32> -> vector<2x1x1xf32>
    %c0_5 = arith.constant 0 : index
    %c0_6 = arith.constant 0 : index
    %c0_7 = arith.constant 0 : index
    %12 = vector.load %arg1[%c0_5, %c0_6, %c0_7] : memref<1x4x1xf32, #tpu.memory_space<vmem>>, vector<1x4x1xf32>
    %13 = vector.broadcast %11 : vector<2x1x1xf32> to vector<2x4x1xf32>
    %14 = arith.mulf %4, %13 : vector<2x4x1xf32>
    %15 = vector.broadcast %12 : vector<1x4x1xf32> to vector<2x4x1xf32>
    %16 = arith.mulf %15, %14 : vector<2x4x1xf32>
    %c0_8 = arith.constant 0 : index
    %c0_9 = arith.constant 0 : index
    %c0_10 = arith.constant 0 : index
    %17 = vector.load %arg2[%c0_8, %c0_9, %c0_10] : memref<1x4x1xf32, #tpu.memory_space<vmem>>, vector<1x4x1xf32>
    %18 = vector.broadcast %17 : vector<1x4x1xf32> to vector<2x4x1xf32>
    %19 = arith.addf %16, %18 : vector<2x4x1xf32>
    %20 = vector.broadcast %19 : vector<2x4x1xf32> to vector<2x4x256xf32>
    %21 = arith.mulf %20, %0 : vector<2x4x256xf32>
    %c0_11 = arith.constant 0 : index
    %c0_12 = arith.constant 0 : index
    %c0_13 = arith.constant 0 : index
    %22 = vector.load %arg4[%c0_11, %c0_12, %c0_13] : memref<2x4x256xf32, #tpu.memory_space<vmem>>, vector<2x4x256xf32>
    tpu.vector_store %arg4[%c0_11, %c0_12, %c0_13], %21 {strides = array<i32>} : memref<2x4x256xf32, #tpu.memory_space<vmem>>, vector<2x4x256xf32>,
    return
  }
  func.func @transform_0(%arg0: i32) -> (i32, i32, i32) {
    %c0_i32 = arith.constant 0 : i32
    %c0_i32_0 = arith.constant 0 : i32
    %c0_i32_1 = arith.constant 0 : i32
    %c0_i32_2 = arith.constant 0 : i32
    return %c0_i32, %c0_i32_0, %c0_i32_1 : i32, i32, i32
  }
  func.func @transform_1(%arg0: i32) -> (i32, i32, i32) {
    %c0_i32 = arith.constant 0 : i32
    %c0_i32_0 = arith.constant 0 : i32
    %c0_i32_1 = arith.constant 0 : i32
    %c0_i32_2 = arith.constant 0 : i32
    return %c0_i32, %c0_i32_0, %c0_i32_1 : i32, i32, i32
  }
  func.func @transform_2(%arg0: i32) -> (i32, i32, i32) {
    %c0_i32 = arith.constant 0 : i32
    %c0_i32_0 = arith.constant 0 : i32
    %c0_i32_1 = arith.constant 0 : i32
    return %arg0, %c0_i32, %c0_i32_0 : i32, i32, i32
  }
  func.func @transform_3(%arg0: i32) -> (i32, i32, i32) {
    %c0_i32 = arith.constant 0 : i32
    %c0_i32_0 = arith.constant 0 : i32
    %c0_i32_1 = arith.constant 0 : i32
    return %arg0, %c0_i32, %c0_i32_0 : i32, i32, i32
  }
}

</mosaic_0001>

<bundles_post_ra>
// kernel: tpu_custom_call.1
= control target key start
LH: loop header
LB: loop body
LE: loop exit
PB: predicated region body
PF: predicated region fallthrough
CT: control target
= control target key end

     0   :  { %vm25_vm0 = vcmask 1043456   ;;  %s233_s0 = inlined_call_operand.vmem [shape: f32[1,4,1], index: 0, kind: input, shape index: {}]   ;;  %s234_s1 = inlined_call_operand.vmem [shape: f32[1,4,1], index: 1, kind: input, shape index: {}]   ;;  %s235_s2 = inlined_call_operand.vmem [shape: f32[2,4,256], index: 2, kind: input, shape index: {}]   ;;  %s236_s3 = inlined_call_operand.hbm [shape: f32[2,4,256], index: 3, kind: output, shape index: {}]  }
   0x1   :  { %v192_v0 = vld [vmem:[%s235_s2] sm:$0xff]  ;;  %v197_v1 = vld [vmem:[%s235_s2 + $0x8] sm:$0xff] }
   0x2   :  { %8 = vsyncpa [#allocation3], 0  ;;  %v17_v2 = vmul.f32 %v192_v0, %v192_v0  ;;  %v18_v3 = vmul.f32 %v197_v1, %v197_v1  ;;  %v165_v12 = vmov 0   ;;  %v71_v44 = vld [vmem:[%s233_s0] sm:$0xf]  ;;  %v91_v53 = vcombine.high %v192_v0, %v192_v0  ;;  %s166_s0 = smov [#allocation2]  }
   0x3   :  { %129 = vset.pattern.permute.xlu1 %v165_v12  ;;  %130 = vset.pattern.permute.xlu0 %v165_v12  ;;  %v76_v46 = vld [vmem:[%s234_s1] sm:$0xf]  ;;  %v92_v57 = vcombine.high %v197_v1, %v197_v1  ;;  %s114_s1 = sshll.u32 %s166_s0, 4  ;;  %s115_s1 = int_to_ptr.vmem [resolvable:$true] %s114_s1 }
   0x4   :  { %v21_v4 = vcombine.high %v17_v2, %v17_v2  ;;  %v26_v5 = vsel %vm25_vm0, %v17_v2, 0.0  ;;  %v22_v6 = vcombine.high %v18_v3, %v18_v3  ;;  %v31_v8 = vsel %vm25_vm0, %v18_v3, 0.0  ;;  %s141_s19 = scalar_lea.vmem %s115_s1, 256  ;;  %p146_p1 = scmp.lt.s32.totalorder %s115_s1, %s115_s1 }
   0x5   :  { %p142_p0 = scmp.ne.s32.totalorder %s115_s1, %s141_s19  ;;  %p147_p2 = scmp.lt.s32.totalorder %s141_s19, %s141_s19 }
   0x6   :  { %v27_v7 = vsel %vm25_vm0, %v21_v4, 0.0  ;;  %v32_v9 = vsel %vm25_vm0, %v22_v6, 0.0 }
   0x7   :  { %v28_v10 = vadd.f32 %v27_v7, %v26_v5  ;;  %v33_v11 = vadd.f32 %v32_v9, %v31_v8  ;;  %p148_p3 = por %p147_p2, %p146_p1 }
   0x9   :  { %29 = vadd.xlane.f32.xlu0 %v28_v10  ;;  %p149_p4 = pnand %p148_p3, %p142_p0 }
   0xd   :  { %34 = vadd.xlane.f32.xlu0 %v33_v11 }
  0x96   :  { %v30_v13 = vpop.xlane.xlu0 %29 }
  0x97   :  { %133 = vrsqrt.f32 %v30_v13  ;;  %vm38_vm1 = vcmp.eq.f32.partialorder %v30_v13, inf  ;;  %v41_v17 = vand.u32 2147483648, %v30_v13  ;;  %vm40_vm2 = vcmp.eq.f32.partialorder %v30_v13, 0.0 }
  0x9a   :  { %v35_v14 = vpop.xlane.xlu0 %34 }
  0x9b   :  { %135 = vrsqrt.f32 %v35_v14  ;;  %vm45_vm3 = vcmp.eq.f32.partialorder %v35_v14, inf  ;;  %v48_v23 = vand.u32 2147483648, %v35_v14  ;;  %vm47_vm4 = vcmp.eq.f32.partialorder %v35_v14, 0.0 }
  0xa1   :  { %v134_v15 = vpop.eup %133 }
  0xa2   :  { %v37_v16 = vmul.f32 %v134_v15, %v30_v13 }
  0xa4   :  { %v39_v18 = vsel %vm38_vm1, %v30_v13, %v37_v16 }
  0xa5   :  { %v136_v19 = vpop.eup %135  ;;  %v42_v20 = vsel %vm40_vm2, %v41_v17, %v39_v18 }
  0xa6   :  { %v44_v21 = vmul.f32 %v136_v19, %v35_v14  ;;  %v50_v22 = vsel %vm25_vm0, %v42_v20, 0.0 }
  0xa7   :  { %v51_v24 = vrot.slane %v50_v22, 4 }
  0xa8   :  { %v46_v25 = vsel %vm45_vm3, %v35_v14, %v44_v21 }
  0xa9   :  { %v52_v26 = vadd.f32 %v51_v24, %v50_v22  ;;  %v49_v27 = vsel %vm47_vm4, %v48_v23, %v46_v25 }
  0xaa   :  { %v57_v28 = vsel %vm25_vm0, %v49_v27, 0.0 }
  0xab   :  { %v53_v29 = vrot.slane %v52_v26, 2  ;;  %v58_v30 = vrot.slane %v57_v28, 4 }
  0xad   :  { %v54_v31 = vadd.f32 %v53_v29, %v52_v26  ;;  %v59_v32 = vadd.f32 %v58_v30, %v57_v28 }
  0xaf   :  { %v55_v33 = vrot.slane %v54_v31, 1  ;;  %v60_v34 = vrot.slane %v59_v32, 2 }
  0xb1   :  { %v56_v35 = vadd.f32 %v55_v33, %v54_v31  ;;  %v61_v36 = vadd.f32 %v60_v34, %v59_v32 }
  0xb3   :  { %v65_v37 = vmul.f32 0.25, %v56_v35  ;;  %v62_v38 = vrot.slane %v61_v36, 1 }
  0xb5   :  { %v67_v39 = vadd.f32 1e-06, %v65_v37  ;;  %v63_v40 = vadd.f32 %v62_v38, %v61_v36 }
  0xb7   :  { %137 = vrcp.f32 %v67_v39  ;;  %v66_v41 = vmul.f32 0.25, %v63_v40 }
  0xb9   :  { %v68_v42 = vadd.f32 1e-06, %v66_v41 }
  0xbb   :  { %139 = vrcp.f32 %v68_v42 }
  0xc1   :  { %v138_v43 = vpop.eup %137 }
  0xc2   :  { %v72_v45 = vmul.f32 %v138_v43, %v42_v20 }
  0xc4   :  { %v74_v47 = vmul.f32 %v72_v45, %v71_v44 }
  0xc5   :  { %v140_v48 = vpop.eup %139 }
  0xc6   :  { %v77_v49 = vadd.f32 %v76_v46, %v74_v47  ;;  %v73_v50 = vmul.f32 %v140_v48, %v49_v27 }
  0xc8   :  { %81 = vperm.xlu1 %129, %v77_v49   ;;  %v75_v51 = vmul.f32 %v73_v50, %v71_v44 }
  0xca   :  { %v78_v52 = vadd.f32 %v76_v46, %v75_v51 }
  0xcc   :  { %86 = vperm.xlu1 %129, %v78_v52  }
 0x147   :  { %v82_v54 = vpop.permute.xlu1 %81 }
 0x148   :  { %v95_v55 = vmul.f32 %v82_v54, %v192_v0  ;;  %v96_v56 = vmul.f32 %v91_v53, %v82_v54 }
 0x14a   :  { %v103_v58 = vcombine.low %v95_v55, %v96_v56 }
 0x14b   :  { %v87_v59 = vpop.permute.xlu1 %86 }
 0x14c   :  { %107 = vst [vmem:[#allocation2] sm:$0xff] %v103_v58  ;;  %v97_v60 = vmul.f32 %v87_v59, %v197_v1  ;;  %v98_v61 = vmul.f32 %v92_v57, %v87_v59 }
 0x14e   :  { %v104_v62 = vcombine.low %v97_v60, %v98_v61 }
 0x150   :  { %108 = vst [vmem:[#allocation2 + $0x8] sm:$0xff] %v104_v62 }
 0x151   :  { %152 = shalt.err (!%p149_p4)
}
 0x152   :  { %s153_s22 = scalar_lea.hbm %s236_s3, 256 }
 0x153   :  { %p154_p5 = scmp.ne.s32.totalorder %s236_s3, %s153_s22  ;;  %p157_p6 = scmp.lt.u32.totalorder %s153_s22, %s236_s3 }
 0x155   :  { %p159_p7 = pnand %p157_p6, %p154_p5 }
 0x157   :  { %162 = shalt.err (!%p159_p7)
}
 0x158   :  { %s167_s27 = smov 128   ;;  %s168_s28 = smov 8  }
 0x159   :  { %120 = dma.vmem_to_hbm [thread:$0]  %s115_s1, 256, %s236_s3, [#allocation3], %s167_s27, %s167_s27, %s168_s28  }
 0x15a   :  { %163 = dma.done.wait [#allocation3], 256  }
 0x15b   :  { %164 = vsyncadd [#allocation3], 4294967040 }
 0x15c   :  { %124 = vsyncpa [#allocation3], 1 }

</bundles_post_ra>
